<compile_context>
chip_gen: v7x
topology: tpu7x:2x2x1
jax: 0.10.0
libtpu: 0.0.40
codegen_flags: <defaults>
</compile_context>

<pallas_src>
import jax
import jax.numpy as jnp
from jax.experimental import pallas as pl
from jax.experimental.pallas import tpu as pltpu


# ------------------------------- kernel -------------------------------------


def _q_mlp_kernel(obs_ref, act_ref, w1o_ref, w1a_ref, b1_ref,
                  w2_ref, b2_ref, w3_ref, b3_ref, o_ref):
    # Hidden layer 1: ReLU(obs @ W1_obs + act @ W1_act + b1)  (fused concat via
    # split W1; the two dots are kept separate -- a proven lowering -- at the
    # cost of one extra MXU push/pop per step.)
    h1 = jnp.dot(obs_ref[...], w1o_ref[...], preferred_element_type=jnp.float32)
    h1 = h1 + jnp.dot(act_ref[...], w1a_ref[...],
                      preferred_element_type=jnp.float32)
    h1 = jnp.maximum(h1 + b1_ref[...], 0.0)

    # Hidden layer 2: ReLU(h1 @ W2 + b2)
    h2 = jnp.dot(h1, w2_ref[...], preferred_element_type=jnp.float32)
    h2 = jnp.maximum(h2 + b2_ref[...], 0.0)

    # Output layer (Identity activation), fan_out = 1:
    #   q[b] = sum_h w3[h] * h2[b, h] + b3
    # computed directly in a lane-dense (1, tile_b) layout by contracting the
    # shared last dim of (1, H2) and (tile_b, H2) -- same MXU pattern as
    # q @ k^T -- so the store is an unmasked, lane-dense write.
    q = jax.lax.dot_general(
        w3_ref[...], h2,
        dimension_numbers=(((1,), (1,)), ((), ())),
        preferred_element_type=jnp.float32)              # (1, tile_b)
    o_ref[0] = q + b3_ref[0, 0]


# ------------------------------ wrapper --------------------------------------


_MAX_TILE_B = 8192  # rows per tile; ~1.5 MiB of double-buffered f32 activations


def _default_tile(batch):
    # Two even tiles (one per TensorCore on v7x; an extra ~0.35 us step on
    # single-TC v5e/v6e is negligible) when the batch is large and splittable;
    # otherwise one full-batch tile (no padding, no per-step overhead); huge
    # batches stream in sublane-aligned 8192-row tiles.
    if batch >= 512 and batch % 16 == 0 and batch // 2 <= _MAX_TILE_B:
        return batch // 2
    if batch <= _MAX_TILE_B:
        return batch
    return _MAX_TILE_B


def prepare_params(params, obs_dim):
    """One-time parameter prep (hoisted out of the per-call forward path).

    `params` follows the PyTorch module: ((W1, b1), (W2, b2), (W3, b3)) with
    W_i of shape (fan_in, fan_out); biases may be (fan_out,) or (1, fan_out).
    """
    (w1, b1), (w2, b2), (w3, b3) = params
    w1 = jnp.asarray(w1, jnp.float32)
    w1o, w1a = w1[:obs_dim], w1[obs_dim:]                 # split for fused concat
    b1 = jnp.reshape(jnp.asarray(b1, jnp.float32), (1, -1))
    w2 = jnp.asarray(w2, jnp.float32)
    b2 = jnp.reshape(jnp.asarray(b2, jnp.float32), (1, -1))
    w3_row = jnp.reshape(jnp.asarray(w3, jnp.float32), (1, -1))  # (H2,1)->(1,H2)
    b3_s = jnp.reshape(jnp.asarray(b3, jnp.float32), (1, 1))     # scalar -> SMEM
    return (w1o, w1a, b1, w2, b2, w3_row, b3_s)


def mlp_q_function(obs, act, prepared, *, tile_b=None):
    """Pallas forward pass: returns q of shape (batch,)."""
    w1o, w1a, b1, w2, b2, w3_row, b3_s = prepared
    obs = obs.astype(jnp.float32)
    act = act.astype(jnp.float32)
    batch, obs_dim = obs.shape
    act_dim = act.shape[-1]
    h1_dim = w1o.shape[-1]
    h2_dim = w2.shape[-1]

    if tile_b is None:
        tile_b = _default_tile(batch)
    num_tiles = pl.cdiv(batch, tile_b)
    if num_tiles > 1:
        assert tile_b % 8 == 0, "multi-tile runs need a sublane-aligned tile"
    padded = num_tiles * tile_b
    if padded != batch:
        # Fallback only (default tile choices divide the batch exactly).
        pad = padded - batch
        obs = jnp.pad(obs, ((0, pad), (0, 0)))
        act = jnp.pad(act, ((0, pad), (0, 0)))

    flops = 2 * padded * ((obs_dim + act_dim) * h1_dim + h1_dim * h2_dim + h2_dim)
    bytes_accessed = 4 * (padded * (obs_dim + act_dim + 1)
                          + (obs_dim + act_dim + 1) * h1_dim
                          + (h1_dim + 1) * h2_dim + h2_dim + 1)

    resident = lambda i: (0, 0)  # weights/biases: same block every grid step
    q = pl.pallas_call(
        _q_mlp_kernel,
        # Lane-dense output: one (1, tile_b) row per grid step.
        out_shape=jax.ShapeDtypeStruct((num_tiles, 1, tile_b), jnp.float32),
        grid=(num_tiles,),
        in_specs=[
            pl.BlockSpec((tile_b, obs_dim), lambda i: (i, 0)),   # obs tile
            pl.BlockSpec((tile_b, act_dim), lambda i: (i, 0)),   # act tile
            pl.BlockSpec((obs_dim, h1_dim), resident),           # W1_obs
            pl.BlockSpec((act_dim, h1_dim), resident),           # W1_act
            pl.BlockSpec((1, h1_dim), resident),                 # b1
            pl.BlockSpec((h1_dim, h2_dim), resident),            # W2
            pl.BlockSpec((1, h2_dim), resident),                 # b2
            pl.BlockSpec((1, h2_dim), resident),                 # W3 (row)
            pl.BlockSpec(memory_space=pltpu.MemorySpace.SMEM),   # b3 scalar
        ],
        out_specs=pl.BlockSpec((1, 1, tile_b), lambda i: (i, 0, 0)),
        compiler_params=pltpu.CompilerParams(
            dimension_semantics=("parallel",)),
        cost_estimate=pl.CostEstimate(
            flops=flops, transcendentals=0, bytes_accessed=bytes_accessed),
    )(obs, act, w1o, w1a, b1, w2, b2, w3_row, b3_s)

    q = jnp.reshape(q, (padded,))
    if padded != batch:
        q = q[:batch]
    return q  # already squeezed: shape (batch,)


# -------------------------- reference & demo ---------------------------------


def init_linear(key, fan_in, fan_out):
    """Deterministic init mimicking torch.nn.Linear default U[-1/sqrt(fan_in), +]."""
    kw, kb = jax.random.split(key)
    bound = 1.0 / jnp.sqrt(jnp.float32(fan_in))
    w = jax.random.uniform(kw, (fan_in, fan_out), jnp.float32, -bound, bound)
    b = jax.random.uniform(kb, (fan_out,), jnp.float32, -bound, bound)
    return w, b


def reference_forward(obs, act, params):
    (w1, b1), (w2, b2), (w3, b3) = params
    x = jnp.concatenate([obs, act], axis=-1)
    h1 = jnp.maximum(x @ w1 + b1.reshape(1, -1), 0.0)
    h2 = jnp.maximum(h1 @ w2 + b2.reshape(1, -1), 0.0)
    return jnp.squeeze(h2 @ w3 + b3.reshape(1, -1), -1)


if __name__ == "__main__":
    batch = 64
    obs_dim = 16
    act_dim = 8
    hidden_sizes = (32, 32)

    key = jax.random.PRNGKey(0)
    k_obs, k_act, k1, k2, k3 = jax.random.split(key, 5)

    obs = jax.random.normal(k_obs, (batch, obs_dim), jnp.float32)
    act = jax.random.normal(k_act, (batch, act_dim), jnp.float32)

    sizes = [obs_dim + act_dim] + list(hidden_sizes) + [1]
    params = (
        init_linear(k1, sizes[0], sizes[1]),
        init_linear(k2, sizes[1], sizes[2]),
        init_linear(k3, sizes[2], sizes[3]),
    )
    prepared = prepare_params(params, obs_dim)   # hoisted, done once
    q_ref = reference_forward(obs, act, params)

    # Multi-tile path: 2 grid steps -> exercises streaming activation tiles,
    # resident weights, and the per-tile lane-dense output.
    q_tiled = jax.block_until_ready(mlp_q_function(obs, act, prepared, tile_b=32))
    # Default path: single full-batch tile (no padding, no per-step overhead).
    q_single = jax.block_until_ready(mlp_q_function(obs, act, prepared))

    assert q_tiled.shape == (batch,), q_tiled.shape
    assert q_single.shape == (batch,), q_single.shape
    assert jnp.allclose(q_tiled, q_ref, atol=1e-5, rtol=1e-5), "tiled mismatch"
    assert jnp.allclose(q_single, q_ref, atol=1e-5, rtol=1e-5), "single-tile mismatch"

    print("KERNEL_OK")
</pallas_src>

<mosaic_0001>
module attributes {stable_mosaic.version = 11 : i64} {
  func.func @_q_mlp_kernel(%arg0: i32, %arg1: memref<32x16xf32, #tpu.memory_space<vmem>>, %arg2: memref<32x8xf32, #tpu.memory_space<vmem>>, %arg3: memref<16x32xf32, #tpu.memory_space<vmem>>, %arg4: memref<8x32xf32, #tpu.memory_space<vmem>>, %arg5: memref<1x32xf32, #tpu.memory_space<vmem>>, %arg6: memref<32x32xf32, #tpu.memory_space<vmem>>, %arg7: memref<1x32xf32, #tpu.memory_space<vmem>>, %arg8: memref<1x32xf32, #tpu.memory_space<vmem>>, %arg9: memref<1x1xf32, #tpu.memory_space<smem>>, %arg10: memref<1x1x32xf32, #tpu.memory_space<vmem>>) attributes {dimension_semantics = [#tpu.dimension_semantics<parallel>], iteration_bounds = array<i64: 2>, scalar_prefetch = 0 : i64, scratch_operands = 0 : i64, tpu.core_type = #tpu.core_type<tc>, window_params = [{transform_indices = @transform_0, window_bounds = array<i64: 32, 16>}, {transform_indices = @transform_1, window_bounds = array<i64: 32, 8>}, {pipeline_mode = #tpu.pipeline_mode<synchronous>, transform_indices = @transform_2, window_bounds = array<i64: 16, 32>}, {pipeline_mode = #tpu.pipeline_mode<synchronous>, transform_indices = @transform_3, window_bounds = array<i64: 8, 32>}, {pipeline_mode = #tpu.pipeline_mode<synchronous>, transform_indices = @transform_4, window_bounds = array<i64: 1, 32>}, {pipeline_mode = #tpu.pipeline_mode<synchronous>, transform_indices = @transform_5, window_bounds = array<i64: 32, 32>}, {pipeline_mode = #tpu.pipeline_mode<synchronous>, transform_indices = @transform_6, window_bounds = array<i64: 1, 32>}, {pipeline_mode = #tpu.pipeline_mode<synchronous>, transform_indices = @transform_7, window_bounds = array<i64: 1, 32>}, {transform_indices = @transform_8, window_bounds = array<i64: 1, 1>}, {transform_indices = @transform_9, window_bounds = array<i64: 1, 1, 32>}]} {
    %c0 = arith.constant 0 : index
    %c0_0 = arith.constant 0 : index
    %0 = vector.load %arg1[%c0, %c0_0] : memref<32x16xf32, #tpu.memory_space<vmem>>, vector<32x16xf32>
    %c0_1 = arith.constant 0 : index
    %c0_2 = arith.constant 0 : index
    %1 = vector.load %arg3[%c0_1, %c0_2] : memref<16x32xf32, #tpu.memory_space<vmem>>, vector<16x32xf32>
    %cst = arith.constant dense<0.000000e+00> : vector<32x32xf32>
    %2 = tpu.matmul %0, %1, %cst {dimension_numbers = #tpu.dot_dimension_numbers<[1], [0], [0], [1], [0, 0, 1, 1], [], []>} : vector<32x16xf32>, vector<16x32xf32>, vector<32x32xf32> -> vector<32x32xf32>
    %c0_3 = arith.constant 0 : index
    %c0_4 = arith.constant 0 : index
    %3 = vector.load %arg2[%c0_3, %c0_4] : memref<32x8xf32, #tpu.memory_space<vmem>>, vector<32x8xf32>
    %c0_5 = arith.constant 0 : index
    %c0_6 = arith.constant 0 : index
    %4 = vector.load %arg4[%c0_5, %c0_6] : memref<8x32xf32, #tpu.memory_space<vmem>>, vector<8x32xf32>
    %cst_7 = arith.constant dense<0.000000e+00> : vector<32x32xf32>
    %5 = tpu.matmul %3, %4, %cst_7 {dimension_numbers = #tpu.dot_dimension_numbers<[1], [0], [0], [1], [0, 0, 1, 1], [], []>} : vector<32x8xf32>, vector<8x32xf32>, vector<32x32xf32> -> vector<32x32xf32>
    %6 = arith.addf %2, %5 : vector<32x32xf32>
    %c0_8 = arith.constant 0 : index
    %c0_9 = arith.constant 0 : index
    %7 = vector.load %arg5[%c0_8, %c0_9] : memref<1x32xf32, #tpu.memory_space<vmem>>, vector<1x32xf32>
    %8 = vector.broadcast %7 : vector<1x32xf32> to vector<32x32xf32>
    %9 = arith.addf %6, %8 : vector<32x32xf32>
    %cst_10 = arith.constant 0.000000e+00 : f32
    %10 = vector.broadcast %cst_10 : f32 to vector<32x32xf32>
    %11 = arith.maximumf %9, %10 : vector<32x32xf32>
    %c0_11 = arith.constant 0 : index
    %c0_12 = arith.constant 0 : index
    %12 = vector.load %arg6[%c0_11, %c0_12] : memref<32x32xf32, #tpu.memory_space<vmem>>, vector<32x32xf32>
    %cst_13 = arith.constant dense<0.000000e+00> : vector<32x32xf32>
    %13 = tpu.matmul %11, %12, %cst_13 {dimension_numbers = #tpu.dot_dimension_numbers<[1], [0], [0], [1], [0, 0, 1, 1], [], []>} : vector<32x32xf32>, vector<32x32xf32>, vector<32x32xf32> -> vector<32x32xf32>
    %c0_14 = arith.constant 0 : index
    %c0_15 = arith.constant 0 : index
    %14 = vector.load %arg7[%c0_14, %c0_15] : memref<1x32xf32, #tpu.memory_space<vmem>>, vector<1x32xf32>
    %15 = vector.broadcast %14 : vector<1x32xf32> to vector<32x32xf32>
    %16 = arith.addf %13, %15 : vector<32x32xf32>
    %cst_16 = arith.constant 0.000000e+00 : f32
    %17 = vector.broadcast %cst_16 : f32 to vector<32x32xf32>
    %18 = arith.maximumf %16, %17 : vector<32x32xf32>
    %c0_17 = arith.constant 0 : index
    %c0_18 = arith.constant 0 : index
    %19 = vector.load %arg8[%c0_17, %c0_18] : memref<1x32xf32, #tpu.memory_space<vmem>>, vector<1x32xf32>
    %cst_19 = arith.constant dense<0.000000e+00> : vector<1x32xf32>
    %20 = tpu.matmul %19, %18, %cst_19 {dimension_numbers = #tpu.dot_dimension_numbers<[1], [1], [0], [0], [0, 0, 1, 0], [], []>} : vector<1x32xf32>, vector<32x32xf32>, vector<1x32xf32> -> vector<1x32xf32>
    %c0_20 = arith.constant 0 : index
    %c0_21 = arith.constant 0 : index
    %21 = memref.load %arg9[%c0_20, %c0_21] : memref<1x1xf32, #tpu.memory_space<smem>>
    %22 = vector.broadcast %21 : f32 to vector<1x32xf32>
    %23 = arith.addf %20, %22 : vector<1x32xf32>
    %c0_22 = arith.constant 0 : index
    %c0_23 = arith.constant 0 : index
    %c0_24 = arith.constant 0 : index
    %24 = vector.load %arg10[%c0_22, %c0_23, %c0_24] : memref<1x1x32xf32, #tpu.memory_space<vmem>>, vector<1x1x32xf32>
    %25 = vector.shape_cast %24 : vector<1x1x32xf32> to vector<1x32xf32>
    %26 = vector.shape_cast %23 : vector<1x32xf32> to vector<1x1x32xf32>
    tpu.vector_store %arg10[%c0_22, %c0_23, %c0_24], %26 {strides = array<i32>} : memref<1x1x32xf32, #tpu.memory_space<vmem>>, vector<1x1x32xf32>,
    return
  }
  func.func @transform_0(%arg0: i32) -> (i32, i32) {
    %c0_i32 = arith.constant 0 : i32
    %c0_i32_0 = arith.constant 0 : i32
    return %arg0, %c0_i32 : i32, i32
  }
  func.func @transform_1(%arg0: i32) -> (i32, i32) {
    %c0_i32 = arith.constant 0 : i32
    %c0_i32_0 = arith.constant 0 : i32
    return %arg0, %c0_i32 : i32, i32
  }
  func.func @transform_2(%arg0: i32) -> (i32, i32) {
    %c0_i32 = arith.constant 0 : i32
    %c0_i32_0 = arith.constant 0 : i32
    %c0_i32_1 = arith.constant 0 : i32
    return %c0_i32, %c0_i32_0 : i32, i32
  }
  func.func @transform_3(%arg0: i32) -> (i32, i32) {
    %c0_i32 = arith.constant 0 : i32
    %c0_i32_0 = arith.constant 0 : i32
    %c0_i32_1 = arith.constant 0 : i32
    return %c0_i32, %c0_i32_0 : i32, i32
  }
  func.func @transform_4(%arg0: i32) -> (i32, i32) {
    %c0_i32 = arith.constant 0 : i32
    %c0_i32_0 = arith.constant 0 : i32
    %c0_i32_1 = arith.constant 0 : i32
    return %c0_i32, %c0_i32_0 : i32, i32
  }
  func.func @transform_5(%arg0: i32) -> (i32, i32) {
    %c0_i32 = arith.constant 0 : i32
    %c0_i32_0 = arith.constant 0 : i32
    %c0_i32_1 = arith.constant 0 : i32
    return %c0_i32, %c0_i32_0 : i32, i32
  }
  func.func @transform_6(%arg0: i32) -> (i32, i32) {
    %c0_i32 = arith.constant 0 : i32
    %c0_i32_0 = arith.constant 0 : i32
    %c0_i32_1 = arith.constant 0 : i32
    return %c0_i32, %c0_i32_0 : i32, i32
  }
  func.func @transform_7(%arg0: i32) -> (i32, i32) {
    %c0_i32 = arith.constant 0 : i32
    %c0_i32_0 = arith.constant 0 : i32
    %c0_i32_1 = arith.constant 0 : i32
    return %c0_i32, %c0_i32_0 : i32, i32
  }
  func.func @transform_8(%arg0: i32) -> (i32, i32) {
    %c0_i32 = arith.constant 0 : i32
    %c0_i32_0 = arith.constant 0 : i32
    %c0_i32_1 = arith.constant 0 : i32
    return %c0_i32, %c0_i32_0 : i32, i32
  }
  func.func @transform_9(%arg0: i32) -> (i32, i32, i32) {
    %c0_i32 = arith.constant 0 : i32
    %c0_i32_0 = arith.constant 0 : i32
    %c0_i32_1 = arith.constant 0 : i32
    return %arg0, %c0_i32, %c0_i32_0 : i32, i32, i32
  }
}

</mosaic_0001>

<bundles_post_ra>
// kernel: tpu_custom_call.1
= control target key start
LH: loop header
LB: loop body
LE: loop exit
PB: predicated region body
PF: predicated region fallthrough
CT: control target
= control target key end

     0   :  { %s1291_s0 = inlined_call_operand.vmem [shape: f32[64,16], index: 0, kind: input, shape index: {}]   ;;  %s1292_s1 = inlined_call_operand.vmem [shape: f32[64,8], index: 1, kind: input, shape index: {}]   ;;  %s1293_s2 = inlined_call_operand.vmem [shape: f32[16,32], index: 2, kind: input, shape index: {}]   ;;  %s1294_s3 = inlined_call_operand.vmem [shape: f32[8,32], index: 3, kind: input, shape index: {}]   ;;  %s1295_s4 = inlined_call_operand.vmem [shape: f32[1,32], index: 4, kind: input, shape index: {}]   ;;  %s1296_s5 = inlined_call_operand.vmem [shape: f32[32,32], index: 5, kind: input, shape index: {}]   ;;  %s1297_s6 = inlined_call_operand.vmem [shape: f32[1,32], index: 6, kind: input, shape index: {}]   ;;  %s1298_s7 = inlined_call_operand.vmem [shape: f32[1,32], index: 7, kind: input, shape index: {}]   ;;  %s1299_s8 = inlined_call_operand.<no memory space> [shape: f32[1,1], index: 8, kind: input, shape index: {}]   ;;  %s1300_s9 = inlined_call_operand.hbm [shape: f32[2,1,32], index: 9, kind: output, shape index: {}]  }
   0x1   :  { %14 = sst [smem:[#allocation2]] %s1299_s8 }
   0x2   :  { %15 = vsyncpa [#allocation4], 0 }
   0x3   :  { %17 = vsyncpa [#allocation4 + $0x1], 0  ;;  %s1144_s11 = smov 0   ;;  %s1146_s12 = smov 0  }
   0x4   :  { %s1148_s13 = smov 0   ;;  %s1150_s14 = smov 0  }
   0x5 LB: > { %s1165_s8 = sadd.s32 4294967295, %s1085_s14   ;;  %s860_s15 = sadd.s32 4294967294, %s1085_s14   ;;  %s1085_s14 = sphi %s1150_s14, %s1306_s14   ;;  %s1081_s13 = sphi %s1148_s13, %s1305_s13   ;;  %s1077_s12 = sphi %s1146_s12, %s1304_s12   ;;  %s1073_s11 = sphi %s1144_s11, %s1303_s11  }
   0x6   : > { %s1169_s16 = sadd.s32 1, %s1085_s14   ;;  %s229_s17 = sadd.s32 1, %s1081_s13 }
   0x7   : > { %s226_s18 = ssub.s32 %s1085_s14, %s1169_s16  ;;  %p239_p0 = scmp.ne.s32.totalorder %s1081_s13, %s1077_s12 }
   0x8   : > { %p227_p1 = scmp.eq.s32.totalorder %s226_s18, 0  ;;  %p240_p2 = scmp.eq.s32.totalorder %s1165_s8, 1 }
   0x9   : > { %p245_p3 = scmp.ne.s32.totalorder %s1077_s12, %s1073_s11  ;;  %p246_p4 = scmp.eq.s32.totalorder %s860_s15, 1 }
   0xa   : > { %s1180_s19 = scalar_select %p227_p1, %s1081_s13, %s229_s17  }
   0xb   : > { %p1182_p5 = por %p240_p2, %p239_p0  ;;  %p1186_p6 = por %p246_p4, %p245_p3 }
   0xc   : > { %p863_p7 = scmp.ge.s32.totalorder %s1085_s14, 1  ;;  %p303_p8 = scmp.lt.s32.totalorder %s1085_s14, 3 }
   0xe   : > { %p304_p9 = pnand %p863_p7, %p303_p8 }
   0xf   : > { %v359_v0 = vld [vmem:[%s1293_s2] sm:$0xff] (!%p304_p9)  ;;  %v360_v1 = vld [vmem:[%s1293_s2 + $0x8] sm:$0xff] (!%p304_p9)  ;;  %s864_s28 = sshll.u32 (!%p304_p9), %s1165_s8, 2  ;;  %vm366_vm0 = vcmask (!%p304_p9), 64512   ;;  %vm464_vm1 = vcmask (!%p304_p9), 130048   ;;  %v579_v15 = vld [vmem:[%s1296_s5 + $0x10] sm:$0xff] (!%p304_p9) }
  0x10   : > { %307 = sbr.rel (%p304_p9) target bundleno = 711 (0x2c7), region = 56  ;;  %v365_v2 = vld [vmem:[%s1294_s3] sm:$0xff] (!%p304_p9)  ;;  %v957_v3 = vpack.c.bf16 (!%p304_p9), %v360_v1, %v359_v0  ;;  %p344_p10 = scmp.lt.s32.totalorder (!%p304_p9), %s864_s28, 7  ;;  %v578_v13 = vld [vmem:[%s1296_s5 + $0x8] sm:$0xff] (!%p304_p9)  ;;  %v580_v16 = vld [vmem:[%s1296_s5 + $0x18] sm:$0xff] (!%p304_p9)  ;;  %vm588_vm2 = vcmask (!%p304_p9), 261120  }
  0x11   : > { %914 = vmatprep.subr.mxu1 (!%p304_p9), %v365_v2  ;;  %v577_v12 = vld [vmem:[%s1296_s5] sm:$0xff] (!%p304_p9)  ;;  %v965_v17 = vpack.c.bf16 (!%p304_p9), %v580_v16, %v579_v15  ;;  %v1087_v39 = vmov (!%p304_p9), 0.0|0.0   ;;  %vm1088_vm3 = vmmov (!%p304_p9), 0   ;;  %v1089_v40 = vmov (!%p304_p9), 0.0   ;;  %vm971_vm4 = vmpackc.low (!%p304_p9), %vm588_vm2, %vm588_vm2  ;;  %s691_s24 = sld [smem:[#allocation2]] (!%p304_p9)  ;;  %s341_s25 = sand.u32 (!%p304_p9), 1, %s1077_s12  }
  0x12   : > { %915 = vmatpush3.msra.mxu1 (!%p304_p9), %v365_v2  ;;  %958 = vmatprep.subr.bf16.mxu0 (!%p304_p9), %v957_v3  ;;  %v961_v14 = vpack.c.bf16 (!%p304_p9), %v578_v13, %v577_v12  ;;  %v876_v20 = vld [vmem:[%s1295_s4] ss:$0 sm:$0xff] (!%p304_p9)  ;;  %s887_s26 = sshll.u32 (!%p304_p9), %s1165_s8, 4  ;;  %s342_s27 = scalar_lea.vmem (!%p304_p9), [#allocation3], %s341_s25  ;;  %vm778_vm5 = vcmask (!%p304_p9), 253952  }
  0x13   : > { %960 = vmatpush3.bf16.msra.mxu0 (!%p304_p9), %v957_v3  ;;  %969 = vmatprep.subr.bf16.mxu1 (!%p304_p9), %v1087_v39  ;;  %v877_v41 = vld [vmem:[%s1297_s6] ss:$0 sm:$0xff] (!%p304_p9)  ;;  %s1249_s10 = scalar_lea.hbm (!%p304_p9), %s1300_s9, %s887_s26  ;;  %s1090_s8 = smov (!%p304_p9), [#allocation3]  }
  0x14   : > { %962 = vmatprep.subr.bf16.mxu0 (!%p304_p9), %v961_v14  ;;  %v690_v56 = vld [vmem:[%s1298_s7] sm:$0x1] (!%p304_p9)  ;;  %s1027_s18 = sshll.u32 (!%p304_p9), %s1090_s8, 4  ;;  %s1028_s18 = int_to_ptr.vmem [resolvable:$false] %s1027_s18 }
  0x17   : > { %s1308_s28 = smov (!%p344_p10, %s864_s28), 7  ;;  %v692_v57 = vstv %s691_s24 }
  0x18   : > { %s865_s29 = sshll.u32 %s1308_s28, 3  ;;  %s793_s28 = sshll.u32 %s342_s27, 4  ;;  %s1251_s28 = int_to_ptr.vmem [resolvable:$true] %s793_s28 }
  0x19   : > { %s353_s15 = scalar_lea.vmem %s1292_s1, %s865_s29  ;;  %s347_s22 = scalar_lea.vmem %s1291_s0, %s865_s29 }
  0x1a   : > { %v361_v4 = vld [vmem:[%s353_s15] sm:$0xff]  ;;  %v362_v6 = vld [vmem:[%s353_s15 + $0x8] sm:$0xff]  ;;  %v363_v8 = vld [vmem:[%s353_s15 + $0x10] sm:$0xff]  ;;  %s1023_s17 = scalar_lea.vmem %s1251_s28, 16  ;;  %p1030_p0 = scmp.lt.s32.totalorder %s1251_s28, %s1028_s18 }
  0x1b   : > { %v355_v5 = vld [vmem:[%s347_s22] sm:$0xff]  ;;  %916 = vmatprep.mubr.msk.f32.mxu1 %vm366_vm0, %v361_v4  ;;  %v356_v7 = vld [vmem:[%s347_s22 + $0x8] sm:$0xff]  ;;  %v357_v9 = vld [vmem:[%s347_s22 + $0x10] sm:$0xff]  ;;  %p1024_p11 = scmp.ne.s32.totalorder %s1251_s28, %s1023_s17 }
  0x1c   : > { %926 = vmatprep.mubr.msk.f32.mxu0 %vm464_vm1, %v355_v5  ;;  %917 = vmatmul.mubr.msk.f32.vlgmr.msra.gmra.mrb[0].mxu1 %vm366_vm0, %v362_v6  ;;  %v364_v10 = vld [vmem:[%s353_s15 + $0x18] sm:$0xff]  ;;  %s781_s15 = scalar_lea.sflag [#allocation4], %s341_s25 }
  0x1d   : > { %927 = vmatmul.mubr.msk.f32.vlgmr.msra.gmra.mrb[0].mxu0 %vm464_vm1, %v356_v7  ;;  %919 = vmatprep.mubr.msk.f32.mxu1 %vm366_vm0, %v363_v8  ;;  %v358_v11 = vld [vmem:[%s347_s22 + $0x18] sm:$0xff]  ;;  %p1025_p12 = pnand %p1024_p11, %p1182_p5  ;;  %s1029_s22 = scalar_lea.vmem %s1028_s18, 32 }
  0x1e   : > { %929 = vmatprep.mubr.msk.f32.mxu0 %vm464_vm1, %v357_v9  ;;  %964 = vmatpush3.bf16.msra.mxu0 %v961_v14  ;;  %p1031_p1 = scmp.lt.s32.totalorder %s1029_s22, %s1023_s17 }
  0x1f   : > { %966 = vmatprep.subr.bf16.mxu0 %v965_v17  ;;  %p1026_p13 = pneg %p1025_p12 }
  0x20   : > { %920 = vmatmul.mubr.msk.f32.gmra.mrb[2].mxu1 %vm366_vm0, %v364_v10  ;;  %p1032_p2 = por %p1031_p1, %p1030_p0 }
  0x21   : > { %930 = vmatmul.mubr.msk.f32.gmra.mrb[2].mxu0 %vm464_vm1, %v358_v11  ;;  %954 = vmatprep.mubr.msk.f32.mxu1 %vm1088_vm3, %v1089_v40 }
  0x22   : > { %968 = vmatpush3.bf16.msra.mxu0 %v965_v17  ;;  %p1033_p3 = pnand %p1032_p2, %p1026_p13 }
  0xef   : > { %v918_v18 = vpop.f32.mrb[0].mxu1 }
  0xf0   : > { %v928_v19 = vpop.f32.mrb[0].mxu0  ;;  %v445_v22 = vpop.f32.mrb[1].mxu1 }
  0xf1   : > { %v549_v21 = vadd.f32 %v928_v19, %v918_v18  ;;  %v543_v23 = vpop.f32.mrb[1].mxu0 }
  0xf2   : > { %v544_v24 = vadd.f32 %v543_v23, %v445_v22 }
  0xf3   : > { %v570_v25 = vadd.f32 %v876_v20, %v549_v21  ;;  %v921_v27 = vpop.f32.mrb[2].mxu1 }
  0xf4   : > { %v569_v26 = vadd.f32 %v876_v20, %v544_v24  ;;  %v931_v28 = vpop.f32.mrb[2].mxu0  ;;  %v455_v30 = vpop.f32.mrb[3].mxu1 }
  0xf5   : > { %v559_v29 = vadd.f32 %v931_v28, %v921_v27  ;;  %v553_v31 = vpop.f32.mrb[3].mxu0  ;;  %v574_v34 = vmax.f32 %v570_v25, 0.0 }
  0xf6   : > { %v573_v32 = vmax.f32 %v569_v26, 0.0  ;;  %v554_v33 = vadd.f32 %v553_v31, %v455_v30 }
  0xf7   : > { %v572_v35 = vadd.f32 %v876_v20, %v559_v29 }
  0xf8   : > { %v571_v36 = vadd.f32 %v876_v20, %v554_v33  ;;  %940 = vmatprep.mubr.msk.f32.mxu0 %vm588_vm2, %v573_v32 }
  0xf9   : > { %v576_v37 = vmax.f32 %v572_v35, 0.0  ;;  %941 = vmatmul.mubr.msk.f32.vlgmr.msra.gmra.mrb[4].mxu0 %vm588_vm2, %v574_v34 }
  0xfa   : > { %v575_v38 = vmax.f32 %v571_v36, 0.0 }
  0xfc   : > { %943 = vmatprep.mubr.msk.f32.mxu0 %vm588_vm2, %v575_v38 }
  0xfd   : > { %944 = vmatmul.mubr.msk.f32.gmra.mrb[6].mxu0 %vm588_vm2, %v576_v37 }
 0x1cc   : > { %v942_v42 = vpop.f32.mrb[4].mxu0 }
 0x1cd   : > { %v673_v43 = vadd.f32 %v942_v42, %v877_v41  ;;  %v667_v44 = vpop.f32.mrb[5].mxu0 }
 0x1ce   : > { %v668_v45 = vadd.f32 %v877_v41, %v667_v44 }
 0x1cf   : > { %v687_v46 = vmax.f32 %v673_v43, 0.0 }
 0x1d0   : > { %v686_v47 = vmax.f32 %v668_v45, 0.0  ;;  %v945_v48 = vpop.f32.mrb[6].mxu0 }
 0x1d1   : > { %v683_v49 = vadd.f32 %v945_v48, %v877_v41  ;;  %v677_v50 = vpop.f32.mrb[7].mxu0 }
 0x1d2   : > { %v970_v51 = vpack.c.bf16 %v687_v46, %v686_v47  ;;  %v678_v52 = vadd.f32 %v877_v41, %v677_v50 }
 0x1d3   : > { %v689_v53 = vmax.f32 %v683_v49, 0.0 }
 0x1d4   : > { %v688_v54 = vmax.f32 %v678_v52, 0.0  ;;  %972 = vmatpush3.bf16.xpose.msk.msra.mxu1 %vm971_vm4, %v970_v51 }
 0x1d5   : > { %973 = vmatprep.subr.bf16.mxu1 %v1087_v39 }
 0x1d6   : > { %v974_v55 = vpack.c.bf16 %v689_v53, %v688_v54 }
 0x1dc   : > { %976 = vmatpush3.bf16.xpose.msk.msra.mxu1 %vm971_vm4, %v974_v55 }
 0x1e3   : > { %955 = vmatmul.mubr.msk.f32.vlgmr.msra.gmra.mrb[4].mxu1 %vm588_vm2, %v690_v56 }
 0x2b6   : > { %v774_v58 = vpop.f32.mrb[4].mxu1 }
 0x2b7   : > { %v775_v59 = vadd.f32 %v774_v58, %v692_v57  ;;  %v956_v60 = vpop.f32.mrb[5].mxu1 }
 0x2b9   : > { %779 = vst.msk [vmem:[%s342_s27] sm:$0x1] %vm778_vm5, %v775_v59 }
 0x2ba   : > { %1036 = shalt.err (!%p1033_p3)
}
 0x2bb   : > { %s1037_s23 = scalar_lea.hbm %s1249_s10, 16  ;;  %s1041_s26 = scalar_lea.hbm %s1300_s9, 32 }
 0x2bc   : > { %p1038_p4 = scmp.ne.s32.totalorder %s1249_s10, %s1037_s23  ;;  %p1042_p9 = scmp.lt.u32.totalorder %s1249_s10, %s1300_s9 }
 0x2bd   : > { %p1043_p10 = scmp.lt.u32.totalorder %s1041_s26, %s1037_s23  ;;  %p1045_p12 = scmp.lt.u32.totalorder %s1037_s23, %s1249_s10 }
 0x2be   : > { %p1039_p7 = pnand %p1038_p4, %p1182_p5 }
 0x2bf   : > { %p1044_p11 = por %p1043_p10, %p1042_p9 }
 0x2c0   : > { %p1040_p8 = pneg %p1039_p7 }
 0x2c1   : > { %p1046_p13 = por %p1045_p12, %p1044_p11 }
 0x2c3   : > { %p1047_p0 = pnand %p1046_p13, %p1040_p8 }
 0x2c5   : > { %1050 = shalt.err (!%p1047_p0)
}
 0x2c6   : > { %981 = dma.vmem_to_hbm [thread:$0]  (%p1182_p5), %s1251_s28, 16, %s1249_s10, %s781_s15  }
 0x2c7 PF: > { %p987_p1 = scmp.ge.s32.totalorder %s1085_s14, 2  ;;  %s805_s30 = sand.u32 1, %s1073_s11  }
 0x2c8   : > { %s806_s17 = scalar_lea.sflag [#allocation4], %s805_s30 }
 0x2c9   : > { %p984_p2 = pnand %p987_p1, %p1186_p6 }
 0x2cb   : > { %1068 = dma.done.wait (!%p984_p2), %s806_s17, 16  }
 0x2cc   : > { %1070 = vsyncadd (!%p984_p2), %s806_s17, 4294967280  ;;  %p20_p3 = scmp.ge.s32.totalorder %s1169_s16, 4   ;;  %s1303_s11 = smov %s1077_s12 }
 0x2cd   : > { %s1304_s12 = smov %s1081_s13  ;;  %s1305_s13 = smov %s1180_s19 }
 0x2ce   : > { %s1306_s14 = smov %s1169_s16  ;;  %22 = sbr.rel (!%p20_p3) target bundleno = 5 (0x5), region = 94 }
 0x2d5   :  { %810 = vsyncpa [#allocation4], 1 }
 0x2d6   :  { %812 = vsyncpa [#allocation4 + $0x1], 1 }

</bundles_post_ra>
